<compile_context>
chip_gen: v7x
topology: tpu7x:2x2x1
jax: 0.10.0
libtpu: 0.0.40
codegen_flags: <defaults>
</compile_context>

<pallas_src>
import jax
import jax.numpy as jnp
from jax import lax
from jax.experimental import pallas as pl
from jax.experimental.pallas import tpu as pltpu


def _gelu_exact(x):
    # PyTorch F.gelu default: exact erf-based GELU.
    return 0.5 * x * (1.0 + lax.erf(x * (1.0 / jnp.sqrt(2.0).astype(x.dtype))))


def decision_kernel(xs_ref, w1_ref, b1_ref, w2_ref, o_ref):
    # xs_ref: (2B, 768)  stacked [x1; x2]
    # w1_ref: (768, 64), b1_ref: (1, 64), w2_ref: (1, 64) (fc2 weight as a row)
    B = o_ref.shape[0]

    # fc1 for both branches in one MXU matmul.
    h = jnp.dot(xs_ref[...], w1_ref[...],
                preferred_element_type=jnp.float32) + b1_ref[...]   # (2B, 64)
    g = _gelu_exact(h)

    # fc2 (output width 1): VPU multiply + lane reduce instead of an MXU matmul.
    # b2 is omitted — log_softmax over dim=1 is invariant to a common bias.
    r = jnp.sum(g * w2_ref[...], axis=-1, keepdims=True)            # (2B, 1)

    # Split back into the two branches and use the closed-form 2-class
    # log_softmax:  out = [-softplus(d), d - softplus(d)], d = r2 - r1,
    # with the numerically stable softplus(d) = max(d,0) + log1p(exp(-|d|)).
    d = r[B:2 * B, :] - r[0:B, :]                                    # (B, 1)
    sp = jnp.maximum(d, 0.0) + jnp.log1p(jnp.exp(-jnp.abs(d)))       # (B, 1)

    col = lax.broadcasted_iota(jnp.int32, (B, 2), 1)
    o_ref[...] = jnp.where(col == 0, -sp, d - sp)


def decision_model(x1, x2, w1, b1, w2, b2=None):
    # b2 is accepted for interface compatibility but unused: the final
    # log_softmax cancels any bias added to both logits.
    del b2
    B = x1.shape[0]
    xs = jnp.concatenate([x1, x2], axis=0)       # (2B, 768): one DMA, one matmul
    w2_row = w2.reshape(1, -1)                   # (64, 1) -> (1, 64)

    vmem = pl.BlockSpec(memory_space=pltpu.MemorySpace.VMEM)
    return pl.pallas_call(
        decision_kernel,
        out_shape=jax.ShapeDtypeStruct((B, 2), jnp.float32),
        in_specs=[vmem] * 4,
        out_specs=vmem,
    )(xs, w1, b1, w2_row)


def _reference(x1, x2, w1, b1, w2, b2):
    # Faithful port of the PyTorch forward (includes b2).
    def head(x):
        h = x @ w1 + b1
        g = 0.5 * h * (1.0 + lax.erf(h / jnp.sqrt(2.0)))
        return g @ w2 + b2
    logits = jnp.concatenate([head(x1), head(x2)], axis=1)
    return jax.nn.log_softmax(logits, axis=1)


if __name__ == "__main__":
    key = jax.random.PRNGKey(0)
    k1, k2, k3, k4, k5, k6 = jax.random.split(key, 6)

    B, D_IN, D_HID = 8, 768, 64

    # Deterministic synthetic parameters (shapes match nn.Linear(768,64), nn.Linear(64,1)).
    # nn.Linear stores weight as (out, in); we keep the (in, out) transpose for x @ W.
    w1 = (jax.random.uniform(k1, (D_IN, D_HID), jnp.float32, -1.0, 1.0)
          / jnp.sqrt(D_IN).astype(jnp.float32))
    b1 = (jax.random.uniform(k2, (1, D_HID), jnp.float32, -1.0, 1.0)
          / jnp.sqrt(D_IN).astype(jnp.float32))
    w2 = (jax.random.uniform(k3, (D_HID, 1), jnp.float32, -1.0, 1.0)
          / jnp.sqrt(D_HID).astype(jnp.float32))
    b2 = (jax.random.uniform(k4, (1, 1), jnp.float32, -1.0, 1.0)
          / jnp.sqrt(D_HID).astype(jnp.float32))

    x1 = jax.random.normal(k5, (B, D_IN), jnp.float32)
    x2 = jax.random.normal(k6, (B, D_IN), jnp.float32)

    out = decision_model(x1, x2, w1, b1, w2, b2)
    out = jax.block_until_ready(out)

    ref = _reference(x1, x2, w1, b1, w2, b2)
    assert out.shape == (B, 2)
    assert jnp.allclose(out, ref, atol=1e-5, rtol=1e-5), (out, ref)

    print("KERNEL_OK")
</pallas_src>

<mosaic_0001>
module attributes {stable_mosaic.version = 11 : i64} {
  func.func @decision_kernel(%arg0: memref<16x768xf32, #tpu.memory_space<vmem>>, %arg1: memref<768x64xf32, #tpu.memory_space<vmem>>, %arg2: memref<1x64xf32, #tpu.memory_space<vmem>>, %arg3: memref<1x64xf32, #tpu.memory_space<vmem>>, %arg4: memref<8x2xf32, #tpu.memory_space<vmem>>) attributes {dimension_semantics = [], scalar_prefetch = 0 : i64, scratch_operands = 0 : i64, tpu.core_type = #tpu.core_type<tc>} {
    %c0 = arith.constant 0 : index
    %c0_0 = arith.constant 0 : index
    %0 = vector.load %arg0[%c0, %c0_0] : memref<16x768xf32, #tpu.memory_space<vmem>>, vector<16x768xf32>
    %c0_1 = arith.constant 0 : index
    %c0_2 = arith.constant 0 : index
    %1 = vector.load %arg1[%c0_1, %c0_2] : memref<768x64xf32, #tpu.memory_space<vmem>>, vector<768x64xf32>
    %cst = arith.constant dense<0.000000e+00> : vector<16x64xf32>
    %2 = tpu.matmul %0, %1, %cst {dimension_numbers = #tpu.dot_dimension_numbers<[1], [0], [0], [1], [0, 0, 1, 1], [], []>} : vector<16x768xf32>, vector<768x64xf32>, vector<16x64xf32> -> vector<16x64xf32>
    %c0_3 = arith.constant 0 : index
    %c0_4 = arith.constant 0 : index
    %3 = vector.load %arg2[%c0_3, %c0_4] : memref<1x64xf32, #tpu.memory_space<vmem>>, vector<1x64xf32>
    %4 = vector.broadcast %3 : vector<1x64xf32> to vector<16x64xf32>
    %5 = arith.addf %2, %4 : vector<16x64xf32>
    %cst_5 = arith.constant 5.000000e-01 : f32
    %6 = vector.broadcast %cst_5 : f32 to vector<16x64xf32>
    %7 = arith.mulf %6, %5 : vector<16x64xf32>
    %cst_6 = arith.constant 2.000000e+00 : f32
    %8 = math.sqrt %cst_6 : f32
    %cst_7 = arith.constant 1.000000e+00 : f32
    %9 = arith.divf %cst_7, %8 : f32
    %10 = vector.broadcast %9 : f32 to vector<16x64xf32>
    %11 = arith.mulf %5, %10 : vector<16x64xf32>
    %12 = math.erf %11 : vector<16x64xf32>
    %cst_8 = arith.constant 1.000000e+00 : f32
    %13 = vector.broadcast %cst_8 : f32 to vector<16x64xf32>
    %14 = arith.addf %13, %12 : vector<16x64xf32>
    %15 = arith.mulf %7, %14 : vector<16x64xf32>
    %c0_9 = arith.constant 0 : index
    %c0_10 = arith.constant 0 : index
    %16 = vector.load %arg3[%c0_9, %c0_10] : memref<1x64xf32, #tpu.memory_space<vmem>>, vector<1x64xf32>
    %17 = vector.broadcast %16 : vector<1x64xf32> to vector<16x64xf32>
    %18 = arith.mulf %15, %17 : vector<16x64xf32>
    %cst_11 = arith.constant dense<0.000000e+00> : vector<16xf32>
    %19 = vector.multi_reduction <add>, %18, %cst_11 [1] : vector<16x64xf32> to vector<16xf32>
    %20 = vector.shape_cast %19 : vector<16xf32> to vector<16x1xf32>
    %21 = vector.extract_strided_slice %20 {offsets = [8, 0], sizes = [8, 1], strides = [1, 1]} : vector<16x1xf32> to vector<8x1xf32>
    %22 = vector.extract_strided_slice %20 {offsets = [0, 0], sizes = [8, 1], strides = [1, 1]} : vector<16x1xf32> to vector<8x1xf32>
    %23 = arith.subf %21, %22 : vector<8x1xf32>
    %cst_12 = arith.constant 0.000000e+00 : f32
    %24 = vector.broadcast %cst_12 : f32 to vector<8x1xf32>
    %25 = arith.maximumf %23, %24 : vector<8x1xf32>
    %26 = math.absf %23 : vector<8x1xf32>
    %cst_13 = arith.constant 0.000000e+00 : f32
    %27 = vector.broadcast %cst_13 : f32 to vector<8x1xf32>
    %28 = arith.subf %27, %26 : vector<8x1xf32>
    %29 = math.exp %28 : vector<8x1xf32>
    %30 = math.log1p %29 : vector<8x1xf32>
    %31 = arith.addf %25, %30 : vector<8x1xf32>
    %32 = tpu.iota {dimensions = array<i32: 1>} : vector<8x2xi32>
    %c0_i32 = arith.constant 0 : i32
    %33 = vector.broadcast %c0_i32 : i32 to vector<8x2xi32>
    %34 = arith.cmpi eq, %32, %33 : vector<8x2xi32>
    %cst_14 = arith.constant 0.000000e+00 : f32
    %35 = vector.broadcast %cst_14 : f32 to vector<8x1xf32>
    %36 = arith.subf %35, %31 : vector<8x1xf32>
    %37 = arith.subf %23, %31 : vector<8x1xf32>
    %38 = vector.shape_cast %36 : vector<8x1xf32> to vector<8x1xf32>
    %39 = vector.broadcast %38 : vector<8x1xf32> to vector<8x2xf32>
    %40 = vector.shape_cast %37 : vector<8x1xf32> to vector<8x1xf32>
    %41 = vector.broadcast %40 : vector<8x1xf32> to vector<8x2xf32>
    %42 = arith.select %34, %39, %41 : vector<8x2xi1>, vector<8x2xf32>
    %c0_15 = arith.constant 0 : index
    %c0_16 = arith.constant 0 : index
    %43 = vector.load %arg4[%c0_15, %c0_16] : memref<8x2xf32, #tpu.memory_space<vmem>>, vector<8x2xf32>
    tpu.vector_store %arg4[%c0_15, %c0_16], %42 {strides = array<i32>} : memref<8x2xf32, #tpu.memory_space<vmem>>, vector<8x2xf32>,
    return
  }
}

</mosaic_0001>

<bundles_post_ra>
// kernel: tpu_custom_call.1
= control target key start
LH: loop header
LB: loop body
LE: loop exit
PB: predicated region body
PF: predicated region fallthrough
CT: control target
= control target key end

     0   :  { %vm376_vm0 = vcmask 523264   ;;  %vm405_vm3 = vcmask 15360   ;;  %s1005_s1 = inlined_call_operand.vmem [shape: f32[768,64], index: 1, kind: input, shape index: {}]   ;;  %s1006_s0 = inlined_call_operand.vmem [shape: f32[16,768], index: 0, kind: input, shape index: {}]   ;;  %s1007_s2 = inlined_call_operand.vmem [shape: f32[1,64], index: 2, kind: input, shape index: {}]   ;;  %s1008_s3 = inlined_call_operand.vmem [shape: f32[1,64], index: 3, kind: input, shape index: {}]   ;;  %s1009_s4 = inlined_call_operand.vmem [shape: f32[8,2], index: 4, kind: output, shape index: {}]  }
   0x1   :  { %v45_v0 = vld [vmem:[%s1005_s1 + $0x80] sm:$0xff]  ;;  %v46_v1 = vld [vmem:[%s1005_s1 + $0x88] sm:$0xff]  ;;  %v47_v11 = vld [vmem:[%s1005_s1 + $0x90] sm:$0xff] }
   0x2   :  { %v77_v2 = vld [vmem:[%s1005_s1 + $0x180] sm:$0xff]  ;;  %v527_v3 = vpack.c.bf16 %v46_v1, %v45_v0  ;;  %v78_v4 = vld [vmem:[%s1005_s1 + $0x188] sm:$0xff]  ;;  %v48_v13 = vld [vmem:[%s1005_s1 + $0x98] sm:$0xff] }
   0x3   :  { %v29_v5 = vld [vmem:[%s1005_s1] sm:$0xff]  ;;  %v30_v6 = vld [vmem:[%s1005_s1 + $0x8] sm:$0xff]  ;;  %v559_v7 = vpack.c.bf16 %v78_v4, %v77_v2  ;;  %v79_v14 = vld [vmem:[%s1005_s1 + $0x190] sm:$0xff]  ;;  %v531_v16 = vpack.c.bf16 %v48_v13, %v47_v11 }
   0x4   :  { %v529_v8 = vpack.c.bf16 %v30_v6, %v29_v5  ;;  %v61_v9 = vld [vmem:[%s1005_s1 + $0x100] sm:$0xff]  ;;  %v62_v10 = vld [vmem:[%s1005_s1 + $0x108] sm:$0xff]  ;;  %528 = vmatprep.subr.bf16.mxu0 %v527_v3  ;;  %v80_v15 = vld [vmem:[%s1005_s1 + $0x198] sm:$0xff] }
   0x5   :  { %v561_v12 = vpack.c.bf16 %v62_v10, %v61_v9  ;;  %560 = vmatprep.subr.bf16.mxu1 %v559_v7  ;;  %v563_v17 = vpack.c.bf16 %v80_v15, %v79_v14  ;;  %v31_v18 = vld [vmem:[%s1005_s1 + $0x10] sm:$0xff]  ;;  %v32_v19 = vld [vmem:[%s1005_s1 + $0x18] sm:$0xff]  ;;  %v49_v23 = vld [vmem:[%s1005_s1 + $0xa0] sm:$0xff] }
   0x6   :  { %530 = vmatpush3.bf16.msra.mxu0 %v529_v8  ;;  %v63_v20 = vld [vmem:[%s1005_s1 + $0x110] sm:$0xff]  ;;  %v533_v21 = vpack.c.bf16 %v32_v19, %v31_v18  ;;  %v64_v22 = vld [vmem:[%s1005_s1 + $0x118] sm:$0xff]  ;;  %v50_v24 = vld [vmem:[%s1005_s1 + $0xa8] sm:$0xff] }
   0x7   :  { %562 = vmatpush3.bf16.msra.mxu1 %v561_v12  ;;  %532 = vmatprep.subr.bf16.mxu0 %v531_v16  ;;  %v565_v25 = vpack.c.bf16 %v64_v22, %v63_v20  ;;  %v535_v26 = vpack.c.bf16 %v50_v24, %v49_v23  ;;  %v81_v27 = vld [vmem:[%s1005_s1 + $0x1a0] sm:$0xff]  ;;  %v82_v28 = vld [vmem:[%s1005_s1 + $0x1a8] sm:$0xff]  ;;  %v51_v35 = vld [vmem:[%s1005_s1 + $0xb0] sm:$0xff] }
   0x8   :  { %564 = vmatprep.subr.bf16.mxu1 %v563_v17  ;;  %v33_v29 = vld [vmem:[%s1005_s1 + $0x20] sm:$0xff]  ;;  %v567_v30 = vpack.c.bf16 %v82_v28, %v81_v27  ;;  %v34_v31 = vld [vmem:[%s1005_s1 + $0x28] sm:$0xff]  ;;  %v52_v36 = vld [vmem:[%s1005_s1 + $0xb8] sm:$0xff] }
   0x9   :  { %v65_v32 = vld [vmem:[%s1005_s1 + $0x120] sm:$0xff]  ;;  %v66_v33 = vld [vmem:[%s1005_s1 + $0x128] sm:$0xff]  ;;  %v537_v34 = vpack.c.bf16 %v34_v31, %v33_v29  ;;  %v83_v37 = vld [vmem:[%s1005_s1 + $0x1b0] sm:$0xff]  ;;  %v539_v39 = vpack.c.bf16 %v52_v36, %v51_v35 }
   0xa   :  { %534 = vmatpush3.bf16.msra.mxu0 %v533_v21  ;;  %v569_v38 = vpack.c.bf16 %v66_v33, %v65_v32  ;;  %v84_v40 = vld [vmem:[%s1005_s1 + $0x1b8] sm:$0xff]  ;;  %v35_v41 = vld [vmem:[%s1005_s1 + $0x30] sm:$0xff]  ;;  %v53_v46 = vld [vmem:[%s1005_s1 + $0xc0] sm:$0xff] }
   0xb   :  { %566 = vmatpush3.bf16.msra.mxu1 %v565_v25  ;;  %536 = vmatprep.subr.bf16.mxu0 %v535_v26  ;;  %v36_v42 = vld [vmem:[%s1005_s1 + $0x38] sm:$0xff]  ;;  %v571_v43 = vpack.c.bf16 %v84_v40, %v83_v37  ;;  %v67_v44 = vld [vmem:[%s1005_s1 + $0x130] sm:$0xff]  ;;  %v54_v47 = vld [vmem:[%s1005_s1 + $0xc8] sm:$0xff] }
   0xc   :  { %568 = vmatprep.subr.bf16.mxu1 %v567_v30  ;;  %v68_v45 = vld [vmem:[%s1005_s1 + $0x138] sm:$0xff]  ;;  %v85_v48 = vld [vmem:[%s1005_s1 + $0x1c0] sm:$0xff]  ;;  %v86_v49 = vld [vmem:[%s1005_s1 + $0x1c8] sm:$0xff]  ;;  %v541_v50 = vpack.c.bf16 %v36_v42, %v35_v41  ;;  %v543_v52 = vpack.c.bf16 %v54_v47, %v53_v46 }
   0xd   :  { %v573_v51 = vpack.c.bf16 %v68_v45, %v67_v44  ;;  %v37_v53 = vld [vmem:[%s1005_s1 + $0x40] sm:$0xff]  ;;  %v38_v54 = vld [vmem:[%s1005_s1 + $0x48] sm:$0xff]  ;;  %v575_v56 = vpack.c.bf16 %v86_v49, %v85_v48  ;;  %v55_v58 = vld [vmem:[%s1005_s1 + $0xd0] sm:$0xff] }
   0xe   :  { %538 = vmatpush3.bf16.msra.mxu0 %v537_v34  ;;  %v69_v55 = vld [vmem:[%s1005_s1 + $0x140] sm:$0xff]  ;;  %v70_v57 = vld [vmem:[%s1005_s1 + $0x148] sm:$0xff]  ;;  %v56_v59 = vld [vmem:[%s1005_s1 + $0xd8] sm:$0xff]  ;;  %v545_v62 = vpack.c.bf16 %v38_v54, %v37_v53 }
   0xf   :  { %570 = vmatpush3.bf16.msra.mxu1 %v569_v38  ;;  %540 = vmatprep.subr.bf16.mxu0 %v539_v39  ;;  %v87_v60 = vld [vmem:[%s1005_s1 + $0x1d0] sm:$0xff]  ;;  %v88_v61 = vld [vmem:[%s1005_s1 + $0x1d8] sm:$0xff]  ;;  %v577_v63 = vpack.c.bf16 %v70_v57, %v69_v55  ;;  %v547_v0 = vpack.c.bf16 %v56_v59, %v55_v58  ;;  %v57_v6 = vld [vmem:[%s1005_s1 + $0xe0] sm:$0xff] }
  0x10   :  { %572 = vmatprep.subr.bf16.mxu1 %v571_v43  ;;  %v39_v1 = vld [vmem:[%s1005_s1 + $0x50] sm:$0xff]  ;;  %v40_v2 = vld [vmem:[%s1005_s1 + $0x58] sm:$0xff]  ;;  %v579_v4 = vpack.c.bf16 %v88_v61, %v87_v60  ;;  %v58_v7 = vld [vmem:[%s1005_s1 + $0xe8] sm:$0xff] }
  0x11   :  { %v71_v3 = vld [vmem:[%s1005_s1 + $0x150] sm:$0xff]  ;;  %v72_v5 = vld [vmem:[%s1005_s1 + $0x158] sm:$0xff]  ;;  %v89_v8 = vld [vmem:[%s1005_s1 + $0x1e0] sm:$0xff]  ;;  %v549_v10 = vpack.c.bf16 %v40_v2, %v39_v1  ;;  %v551_v14 = vpack.c.bf16 %v58_v7, %v57_v6 }
  0x12   :  { %542 = vmatpush3.bf16.msra.mxu0 %v541_v50  ;;  %v90_v9 = vld [vmem:[%s1005_s1 + $0x1e8] sm:$0xff]  ;;  %v41_v11 = vld [vmem:[%s1005_s1 + $0x60] sm:$0xff]  ;;  %v581_v13 = vpack.c.bf16 %v72_v5, %v71_v3  ;;  %v59_v19 = vld [vmem:[%s1005_s1 + $0xf0] sm:$0xff] }
  0x13   :  { %574 = vmatpush3.bf16.msra.mxu1 %v573_v51  ;;  %544 = vmatprep.subr.bf16.mxu0 %v543_v52  ;;  %v42_v12 = vld [vmem:[%s1005_s1 + $0x68] sm:$0xff]  ;;  %v73_v15 = vld [vmem:[%s1005_s1 + $0x160] sm:$0xff]  ;;  %v583_v18 = vpack.c.bf16 %v90_v9, %v89_v8  ;;  %v60_v20 = vld [vmem:[%s1005_s1 + $0xf8] sm:$0xff] }
  0x14   :  { %576 = vmatprep.subr.bf16.mxu1 %v575_v56  ;;  %v74_v16 = vld [vmem:[%s1005_s1 + $0x168] sm:$0xff]  ;;  %v20_v21 = vld [vmem:[%s1006_s0 + $0x18] sm:$0xff]  ;;  %v91_v22 = vld [vmem:[%s1005_s1 + $0x1f0] sm:$0xff]  ;;  %v553_v24 = vpack.c.bf16 %v42_v12, %v41_v11  ;;  %v555_v26 = vpack.c.bf16 %v60_v20, %v59_v19 }
  0x15   :  { %v18_v17 = vld [vmem:[%s1006_s0 + $0x8] sm:$0xff]  ;;  %v92_v23 = vld [vmem:[%s1005_s1 + $0x1f8] sm:$0xff]  ;;  %271 = vmatprep.mubr.f32.mxu1 %v20_v21  ;;  %v585_v25 = vpack.c.bf16 %v74_v16, %v73_v15  ;;  %v43_v27 = vld [vmem:[%s1005_s1 + $0x70] sm:$0xff] }
  0x16   :  { %546 = vmatpush3.bf16.msra.mxu0 %v545_v62  ;;  %196 = vmatprep.mubr.f32.mxu0 %v18_v17  ;;  %v44_v28 = vld [vmem:[%s1005_s1 + $0x78] sm:$0xff]  ;;  %v75_v29 = vld [vmem:[%s1005_s1 + $0x170] sm:$0xff]  ;;  %v587_v30 = vpack.c.bf16 %v92_v23, %v91_v22  ;;  %v109_v32 = vld [vmem:[%s1005_s1 + $0x280] sm:$0xff] }
  0x17   :  { %578 = vmatpush3.bf16.msra.mxu1 %v577_v63  ;;  %548 = vmatprep.subr.bf16.mxu0 %v547_v0  ;;  %v76_v31 = vld [vmem:[%s1005_s1 + $0x178] sm:$0xff]  ;;  %v110_v33 = vld [vmem:[%s1005_s1 + $0x288] sm:$0xff]  ;;  %v557_v34 = vpack.c.bf16 %v44_v28, %v43_v27  ;;  %v93_v37 = vld [vmem:[%s1005_s1 + $0x200] sm:$0xff] }
  0x18   :  { %580 = vmatprep.subr.bf16.mxu1 %v579_v4  ;;  %v589_v35 = vpack.c.bf16 %v76_v31, %v75_v29  ;;  %v591_v36 = vpack.c.bf16 %v110_v33, %v109_v32  ;;  %v94_v38 = vld [vmem:[%s1005_s1 + $0x208] sm:$0xff]  ;;  %v111_v39 = vld [vmem:[%s1005_s1 + $0x290] sm:$0xff]  ;;  %v112_v40 = vld [vmem:[%s1005_s1 + $0x298] sm:$0xff] }
  0x19   :  { %v17_v41 = vld [vmem:[%s1006_s0] sm:$0xff]  ;;  %v593_v42 = vpack.c.bf16 %v94_v38, %v93_v37  ;;  %v19_v43 = vld [vmem:[%s1006_s0 + $0x10] sm:$0xff]  ;;  %v595_v44 = vpack.c.bf16 %v112_v40, %v111_v39  ;;  %v96_v46 = vld [vmem:[%s1005_s1 + $0x218] sm:$0xff] }
  0x1a   :  { %550 = vmatpush3.bf16.msra.mxu0 %v549_v10  ;;  %v95_v45 = vld [vmem:[%s1005_s1 + $0x210] sm:$0xff]  ;;  %v113_v47 = vld [vmem:[%s1005_s1 + $0x2a0] sm:$0xff]  ;;  %v114_v48 = vld [vmem:[%s1005_s1 + $0x2a8] sm:$0xff] }
  0x1b   :  { %582 = vmatpush3.bf16.msra.mxu1 %v581_v13  ;;  %552 = vmatprep.subr.bf16.mxu0 %v551_v14  ;;  %v24_v49 = vld [vmem:[%s1006_s0 + $0x38] sm:$0xff]  ;;  %v597_v50 = vpack.c.bf16 %v96_v46, %v95_v45  ;;  %v23_v51 = vld [vmem:[%s1006_s0 + $0x30] sm:$0xff]  ;;  %v26_v52 = vld [vmem:[%s1006_s0 + $0x48] sm:$0xff]  ;;  %v599_v53 = vpack.c.bf16 %v114_v48, %v113_v47 }
  0x1c   :  { %584 = vmatprep.subr.bf16.mxu1 %v583_v18  ;;  %v97_v54 = vld [vmem:[%s1005_s1 + $0x220] sm:$0xff]  ;;  %v98_v55 = vld [vmem:[%s1005_s1 + $0x228] sm:$0xff]  ;;  %v115_v57 = vld [vmem:[%s1005_s1 + $0x2b0] sm:$0xff] }
  0x1d   :  { %v25_v56 = vld [vmem:[%s1006_s0 + $0x40] sm:$0xff]  ;;  %v116_v58 = vld [vmem:[%s1005_s1 + $0x2b8] sm:$0xff]  ;;  %v22_v59 = vld [vmem:[%s1006_s0 + $0x28] sm:$0xff]  ;;  %v601_v60 = vpack.c.bf16 %v98_v55, %v97_v54 }
  0x1e   :  { %554 = vmatpush3.bf16.msra.mxu0 %v553_v24  ;;  %v28_v61 = vld [vmem:[%s1006_s0 + $0x58] sm:$0xff]  ;;  %v603_v62 = vpack.c.bf16 %v116_v58, %v115_v57  ;;  %v99_v63 = vld [vmem:[%s1005_s1 + $0x230] sm:$0xff]  ;;  %v117_v1 = vld [vmem:[%s1005_s1 + $0x2c0] sm:$0xff] }
  0x1f   :  { %586 = vmatpush3.bf16.msra.mxu1 %v585_v25  ;;  %556 = vmatprep.subr.bf16.mxu0 %v555_v26  ;;  %v100_v0 = vld [vmem:[%s1005_s1 + $0x238] sm:$0xff]  ;;  %v118_v2 = vld [vmem:[%s1005_s1 + $0x2c8] sm:$0xff]  ;;  %v101_v5 = vld [vmem:[%s1005_s1 + $0x240] sm:$0xff] }
  0x20   :  { %588 = vmatprep.subr.bf16.mxu1 %v587_v30  ;;  %v605_v3 = vpack.c.bf16 %v100_v0, %v99_v63  ;;  %v607_v4 = vpack.c.bf16 %v118_v2, %v117_v1  ;;  %v102_v6 = vld [vmem:[%s1005_s1 + $0x248] sm:$0xff]  ;;  %v119_v7 = vld [vmem:[%s1005_s1 + $0x2d0] sm:$0xff]  ;;  %v120_v8 = vld [vmem:[%s1005_s1 + $0x2d8] sm:$0xff] }
  0x21   :  { %v609_v9 = vpack.c.bf16 %v102_v6, %v101_v5  ;;  %v611_v10 = vpack.c.bf16 %v120_v8, %v119_v7  ;;  %v103_v11 = vld [vmem:[%s1005_s1 + $0x250] sm:$0xff]  ;;  %v104_v12 = vld [vmem:[%s1005_s1 + $0x258] sm:$0xff]  ;;  %v121_v13 = vld [vmem:[%s1005_s1 + $0x2e0] sm:$0xff] }
  0x22   :  { %558 = vmatpush3.bf16.msra.mxu0 %v557_v34  ;;  %v122_v14 = vld [vmem:[%s1005_s1 + $0x2e8] sm:$0xff]  ;;  %v613_v15 = vpack.c.bf16 %v104_v12, %v103_v11  ;;  %v105_v17 = vld [vmem:[%s1005_s1 + $0x260] sm:$0xff]  ;;  %v123_v19 = vld [vmem:[%s1005_s1 + $0x2f0] sm:$0xff] }
  0x23   :  { %590 = vmatpush3.bf16.msra.mxu1 %v589_v35  ;;  %592 = vmatprep.subr.bf16.mxu0 %v591_v36  ;;  %v615_v16 = vpack.c.bf16 %v122_v14, %v121_v13  ;;  %v106_v18 = vld [vmem:[%s1005_s1 + $0x268] sm:$0xff]  ;;  %v124_v20 = vld [vmem:[%s1005_s1 + $0x2f8] sm:$0xff]  ;;  %v107_v23 = vld [vmem:[%s1005_s1 + $0x270] sm:$0xff]  ;;  %v399_v13 = vlaneseq }
  0x24   :  { %623 = vmatprep.subr.bf16.mxu1 %v591_v36  ;;  %v617_v21 = vpack.c.bf16 %v106_v18, %v105_v17  ;;  %v619_v22 = vpack.c.bf16 %v124_v20, %v123_v19  ;;  %v108_v24 = vld [vmem:[%s1005_s1 + $0x278] sm:$0xff]  ;;  %v21_v26 = vld [vmem:[%s1006_s0 + $0x20] sm:$0xff]  ;;  %v27_v27 = vld [vmem:[%s1006_s0 + $0x50] sm:$0xff] }
  0x25   :  { %197 = vmatmul.mubr.f32.vlgmr.msra.gmra.mrb[0].mxu0 %v17_v41  ;;  %v621_v25 = vpack.c.bf16 %v108_v24, %v107_v23  ;;  %v411_v29 = vld [vmem:[%s1007_s2] ss:$0 sm:$0xff]  ;;  %v400_v17 = vand.u32 127, %v399_v13 }
  0x26   :  { %272 = vmatmul.mubr.f32.vlgmr.msra.gmra.mrb[0].mxu1 %v19_v43  ;;  %594 = vmatpush3.bf16.msra.mxu0 %v593_v42 }
  0x27   :  { %631 = vmatpush3.bf16.msra.mxu1 %v593_v42  ;;  %596 = vmatprep.subr.bf16.mxu0 %v595_v44  ;;  %vm401_vm2 = vcmp.eq.s32.totalorder %v400_v17, 0 }
  0x28   :  { %624 = vmatprep.subr.bf16.mxu1 %v595_v44  ;;  %201 = vmatprep.mubr.f32.mxu0 %v24_v49 }
  0x29   :  { %202 = vmatmul.mubr.f32.gmra.mrb[2].mxu0 %v23_v51  ;;  %276 = vmatprep.mubr.f32.mxu1 %v26_v52 }
  0x2a   :  { %598 = vmatpush3.bf16.msra.mxu0 %v597_v50  ;;  %277 = vmatmul.mubr.f32.gmra.mrb[2].mxu1 %v25_v56 }
  0x2b   :  { %632 = vmatpush3.bf16.msra.mxu1 %v597_v50  ;;  %600 = vmatprep.subr.bf16.mxu0 %v599_v53 }
  0x2c   :  { %625 = vmatprep.subr.bf16.mxu1 %v599_v53  ;;  %346 = vmatprep.mubr.f32.mxu0 %v22_v59 }
  0x2d   :  { %351 = vmatprep.mubr.f32.mxu1 %v28_v61 }
  0x2e   :  { %602 = vmatpush3.bf16.msra.mxu0 %v601_v60 }
  0x2f   :  { %633 = vmatpush3.bf16.msra.mxu1 %v601_v60  ;;  %604 = vmatprep.subr.bf16.mxu0 %v603_v62  ;;  %v412_v60 = vld [vmem:[%s1008_s3] ss:$0 sm:$0xff] }
  0x30   :  { %626 = vmatprep.subr.bf16.mxu1 %v603_v62 }
  0x32   :  { %606 = vmatpush3.bf16.msra.mxu0 %v605_v3 }
  0x33   :  { %634 = vmatpush3.bf16.msra.mxu1 %v605_v3  ;;  %608 = vmatprep.subr.bf16.mxu0 %v607_v4 }
  0x34   :  { %627 = vmatprep.subr.bf16.mxu1 %v607_v4 }
  0x36   :  { %610 = vmatpush3.bf16.msra.mxu0 %v609_v9 }
  0x37   :  { %635 = vmatpush3.bf16.msra.mxu1 %v609_v9  ;;  %612 = vmatprep.subr.bf16.mxu0 %v611_v10 }
  0x38   :  { %628 = vmatprep.subr.bf16.mxu1 %v611_v10 }
  0x3a   :  { %614 = vmatpush3.bf16.msra.mxu0 %v613_v15 }
  0x3b   :  { %636 = vmatpush3.bf16.msra.mxu1 %v613_v15  ;;  %616 = vmatprep.subr.bf16.mxu0 %v615_v16 }
  0x3c   :  { %629 = vmatprep.subr.bf16.mxu1 %v615_v16 }
  0x3e   :  { %618 = vmatpush3.bf16.msra.mxu0 %v617_v21 }
  0x3f   :  { %637 = vmatpush3.bf16.msra.mxu1 %v617_v21  ;;  %620 = vmatprep.subr.bf16.mxu0 %v619_v22 }
  0x40   :  { %630 = vmatprep.subr.bf16.mxu1 %v619_v22 }
  0x42   :  { %622 = vmatpush3.bf16.msra.mxu0 %v621_v25 }
  0x43   :  { %638 = vmatpush3.bf16.msra.mxu1 %v621_v25 }
  0x45   :  { %347 = vmatmul.mubr.f32.vlgmr.msra.gmra.mrb[4].mxu0 %v21_v26 }
  0x46   :  { %352 = vmatmul.mubr.f32.vlgmr.msra.gmra.mrb[4].mxu1 %v27_v27 }
  0xf8   :  { %v445_v28 = vpop.f32.mrb[0].mxu0 }
  0xf9   :  { %v446_v30 = vpop.f32.mrb[1].mxu0  ;;  %v483_v31 = vpop.f32.mrb[0].mxu1 }
  0xfa   :  { %v447_v32 = vadd.f32 %v446_v30, %v445_v28  ;;  %v484_v33 = vpop.f32.mrb[1].mxu1 }
  0xfb   :  { %v485_v34 = vadd.f32 %v484_v33, %v483_v31 }
  0xfc   :  { %v199_v35 = vadd.f32 %v447_v32, %v411_v29  ;;  %v448_v36 = vpop.f32.mrb[2].mxu0 }
  0xfd   :  { %v449_v37 = vpop.f32.mrb[3].mxu0  ;;  %v486_v38 = vpop.f32.mrb[2].mxu1 }
  0xfe   :  { %v274_v39 = vadd.f32 %v485_v34, %v199_v35  ;;  %v450_v40 = vadd.f32 %v449_v37, %v448_v36  ;;  %v487_v41 = vpop.f32.mrb[3].mxu1 }
  0xff   :  { %v488_v42 = vadd.f32 %v487_v41, %v486_v38 }
 0x100   :  { %v204_v43 = vadd.f32 %v450_v40, %v411_v29 }
 0x102   :  { %v279_v44 = vadd.f32 %v488_v42, %v204_v43 }
 0x118   :  { %v521_v45 = vpop.f32.mrb[4].mxu0 }
 0x119   :  { %v524_v46 = vpop.f32.mrb[4].mxu1  ;;  %v522_v47 = vpop.f32.mrb[5].mxu0 }
 0x11a   :  { %v523_v48 = vadd.f32 %v522_v47, %v521_v45  ;;  %v525_v49 = vpop.f32.mrb[5].mxu1 }
 0x11b   :  { %v526_v50 = vadd.f32 %v525_v49, %v524_v46 }
 0x11c   :  { %v349_v51 = vadd.f32 %v523_v48, %v274_v39 }
 0x11d   :  { %v354_v52 = vadd.f32 %v526_v50, %v279_v44 }
 0x11e   :  { %v359_v53 = vmul.f32 0.70710677, %v349_v51  ;;  %v357_v57 = vmul.f32 0.5, %v349_v51 }
 0x11f   :  { %v360_v54 = vmul.f32 0.70710677, %v354_v52  ;;  %v358_v59 = vmul.f32 0.5, %v354_v52 }
 0x120   :  { %639 = verf.f32 %v359_v53 }
 0x121   :  { %641 = verf.f32 %v360_v54 }
 0x12a   :  { %v640_v55 = vpop.eup %639 }
 0x12b   :  { %v642_v56 = vpop.eup %641  ;;  %v363_v58 = vadd.f32 1.0, %v640_v55 }
 0x12c   :  { %v364_v61 = vadd.f32 1.0, %v642_v56 }
 0x12d   :  { %v365_v62 = vmul.f32 %v363_v58, %v357_v57 }
 0x12e   :  { %v366_v63 = vmul.f32 %v364_v61, %v358_v59 }
 0x12f   :  { %v374_v0 = vmul.f32 %v412_v60, %v365_v62 }
 0x130   :  { %v375_v2 = vmul.f32 %v412_v60, %v366_v63 }
 0x131   :  { %v377_v1 = vsel %vm376_vm0, %v374_v0, 0.0 }
 0x132   :  { %378 = vadd.xlane.f32.xlu0 %v377_v1  ;;  %v380_v3 = vsel %vm376_vm0, %v375_v2, 0.0 }
 0x136   :  { %381 = vadd.xlane.f32.xlu0 %v380_v3 }
 0x1bf   :  { %v379_v4 = vpop.xlane.xlu0 %378 }
 0x1c3   :  { %v382_v5 = vpop.xlane.xlu0 %381 }
 0x1c4   :  { %v383_v6 = vsub.f32 %v382_v5, %v379_v4 }
 0x1c6   :  { %v385_v7 = vand.u32 2147483647, %v383_v6  ;;  %v384_v20 = vmax.f32 %v383_v6, 0.0 }
 0x1c8   :  { %v386_v8 = vsub.f32 0.0, %v385_v7 }
 0x1ca   :  { %v387_v9 = vmul.f32 1.442695, %v386_v8 }
 0x1cc   :  { %643 = vpow2.f32 %v387_v9 }
 0x1d6   :  { %v644_v10 = vpop.eup %643 }
 0x1d7   :  { %v389_v11 = vadd.f32 1.0, %v644_v10  ;;  %v392_v12 = vmul.f32 -0.5, %v644_v10  ;;  %v395_v15 = vand.u32 2147483647, %v644_v10 }
 0x1d9   :  { %645 = vlog2.f32 %v389_v11  ;;  %v393_v14 = vadd.f32 1.0, %v392_v12  ;;  %vm396_vm1 = vcmp.lt.f32.partialorder %v395_v15, 0.0004427343 }
 0x1db   :  { %v394_v19 = vmul.f32 %v644_v10, %v393_v14 }
 0x1e3   :  { %v646_v16 = vpop.eup %645 }
 0x1e4   :  { %v391_v18 = vmul.f32 0.6931472, %v646_v16 }
 0x1e6   :  { %v397_v21 = vsel %vm396_vm1, %v394_v19, %v391_v18 }
 0x1e7   :  { %v398_v22 = vadd.f32 %v397_v21, %v384_v20 }
 0x1e9   :  { %v402_v23 = vsub.f32 0.0, %v398_v22  ;;  %v403_v24 = vsub.f32 %v383_v6, %v398_v22 }
 0x1eb   :  { %v404_v25 = vsel %vm401_vm2, %v402_v23, %v403_v24 }
 0x1ec   :  { %406 = vst.msk [vmem:[%s1009_s4] sm:$0xff] %vm405_vm3, %v404_v25 }

</bundles_post_ra>
